<compile_context>
chip_gen: v5e
topology: v5e:2x2
jax: 0.10.0
libtpu: 0.0.40
codegen_flags: <defaults>
</compile_context>

<pallas_src>
import jax
import jax.numpy as jnp
from jax.experimental import pallas as pl
from jax.experimental.pallas import tpu as pltpu

LANE = 128          # padded hidden feature width for layers 2..6
N_LAYERS = 6        # fc1..fc5 + fc_out
BIAS_ROWS = 8       # bias slab padded to a full sublane group
MAX_TILE_B = 1024   # batch-tile cap (well within v7x 64 MiB / v5e 16 MiB scoped VMEM)


def _round_up(x, m):
    return -(-x // m) * m


# ---------------------------------------------------------------------------
# Pallas kernel: whole MLP fused; one batch tile per grid step.
# ---------------------------------------------------------------------------
def critic_kernel(x_ref, w0_ref, w_ref, b_ref, out_ref):
    # x_ref:   (TILE_B, S)      f32   unpadded state features
    # w0_ref:  (S, 128)         bf16  BN-folded fc1 weight, (in, out) layout
    # w_ref:   (5, 128, 128)    bf16  BN-folded fc2..fc5 + fc_out (zero padded)
    # b_ref:   (8, 128)         f32   rows 0..5 = folded biases
    # out_ref: (TILE_B, A)      f32   A = action_size (narrow, lane-masked store)
    def lrelu(v):
        return jnp.maximum(v, 0.01 * v)        # leaky_relu, default slope

    # Layer 1: K = state_size (no lane padding of the input).
    z = jnp.dot(x_ref[...].astype(jnp.bfloat16), w0_ref[...],
                preferred_element_type=jnp.float32) + b_ref[0]
    h = lrelu(z)
    # Layers 2..6: 128x128 padded weights, static unroll.
    for l in range(1, N_LAYERS):
        z = jnp.dot(h.astype(jnp.bfloat16), w_ref[l - 1],
                    preferred_element_type=jnp.float32) + b_ref[l]
        h = lrelu(z)
    # Only the first action_size lanes are real; store just those.
    out_ref[...] = h[:, :out_ref.shape[1]].astype(out_ref.dtype)


# ---------------------------------------------------------------------------
# Wrapper: pick a batch tile, run the 1-D parallel grid. No pad / slice passes.
# ---------------------------------------------------------------------------
def _pick_tile_b(B):
    if B <= 16:
        return max(8, _round_up(B, 8))
    # >= 2 grid steps whenever B permits (feeds both TensorCores on v7x),
    # capped so per-tile VMEM / scratch stays tiny on every generation.
    return min(MAX_TILE_B, _round_up(-(-B // 2), 8))


def critic_forward(x, w0, w_rest, b_slab, action_size):
    B, S = x.shape
    tile_b = _pick_tile_b(B)
    grid_b = pl.cdiv(B, tile_b)     # partial last tile handled by Pallas

    flops = 2 * B * (S * LANE + (N_LAYERS - 1) * LANE * LANE)
    bytes_accessed = (B * S * 4 + B * action_size * 4
                      + w0.size * 2 + w_rest.size * 2 + b_slab.size * 4)

    return pl.pallas_call(
        critic_kernel,
        out_shape=jax.ShapeDtypeStruct((B, action_size), jnp.float32),
        grid_spec=pltpu.PrefetchScalarGridSpec(
            num_scalar_prefetch=0,
            grid=(grid_b,),
            in_specs=[
                pl.BlockSpec((tile_b, S), lambda i: (i, 0)),                   # activations
                pl.BlockSpec((S, LANE), lambda i: (0, 0)),                     # fc1 weight (resident)
                pl.BlockSpec((N_LAYERS - 1, LANE, LANE), lambda i: (0, 0, 0)), # fc2..out weights (resident)
                pl.BlockSpec((BIAS_ROWS, LANE), lambda i: (0, 0)),             # biases (resident)
            ],
            out_specs=pl.BlockSpec((tile_b, action_size), lambda i: (i, 0)),
        ),
        compiler_params=pltpu.CompilerParams(
            dimension_semantics=("parallel",)),   # batch tiles independent; megacore on v7x
        cost_estimate=pl.CostEstimate(
            flops=flops, transcendentals=0, bytes_accessed=bytes_accessed),
    )(x.astype(jnp.float32), w0, w_rest, b_slab)


# ---------------------------------------------------------------------------
# Deterministic parameter construction (mimics the module's __init__), with
# BN folding and padding of the hidden layers into packed slabs.
# ---------------------------------------------------------------------------
def kaiming_normal(key, out_f, in_f):
    # torch.nn.init.kaiming_normal_ default: fan_in, a=0 -> std = sqrt(2 / fan_in)
    std = (2.0 / in_f) ** 0.5
    return std * jax.random.normal(key, (out_f, in_f), dtype=jnp.float32)


def linear_bias(key, in_f, out_f):
    # torch nn.Linear default bias init: U(-1/sqrt(fan_in), 1/sqrt(fan_in))
    bound = 1.0 / (in_f ** 0.5)
    return jax.random.uniform(key, (out_f,), jnp.float32, -bound, bound)


def build_params(key, state_size, action_size):
    dims = [(state_size, 128), (128, 128), (128, 64), (64, 64), (64, 64),
            (64, action_size)]
    eps = 1e-5
    bn_scale = (1.0 + eps) ** -0.5   # fresh BN in eval: gamma=1, var=1, mean=0, beta=0

    w0_f32 = jnp.zeros((state_size, LANE), jnp.float32)
    w_rest_f32 = jnp.zeros((N_LAYERS - 1, LANE, LANE), jnp.float32)
    b_slab = jnp.zeros((BIAS_ROWS, LANE), jnp.float32)
    for li, (fin, fout) in enumerate(dims):
        key, kw, kb = jax.random.split(key, 3)
        W = kaiming_normal(kw, fout, fin)             # torch layout (out, in)
        b = linear_bias(kb, fin, fout)
        scale = bn_scale if li < 5 else 1.0           # fc_out has no BN
        Wt = W.T * scale                              # (in, out), BN folded
        if li == 0:
            w0_f32 = w0_f32.at[:, :fout].set(Wt)
        else:
            w_rest_f32 = w_rest_f32.at[li - 1, :fin, :fout].set(Wt)
        b_slab = b_slab.at[li, :fout].set(b * scale)
    return (w0_f32.astype(jnp.bfloat16), w_rest_f32.astype(jnp.bfloat16),
            b_slab, w0_f32, w_rest_f32)


# ---------------------------------------------------------------------------
# Pure-JAX references.
# ---------------------------------------------------------------------------
def critic_ref(x, w0, w_rest, b_slab, action_size, cast_bf16):
    def mm(a, w):
        if cast_bf16:
            return jnp.dot(a.astype(jnp.bfloat16), w,
                           preferred_element_type=jnp.float32)
        return a @ w

    z = mm(x.astype(jnp.float32), w0) + b_slab[0]
    h = jnp.maximum(z, 0.01 * z)
    for l in range(1, N_LAYERS):
        z = mm(h, w_rest[l - 1]) + b_slab[l]
        h = jnp.maximum(z, 0.01 * z)
    return h[:, :action_size]


if __name__ == "__main__":
    STATE_SIZE = 16
    ACTION_SIZE = 4
    BATCH = 8

    root = jax.random.PRNGKey(0)
    k_params, k_x = jax.random.split(root)
    w0_bf, w_bf, b_f32, w0_f32, w_f32 = build_params(k_params, STATE_SIZE, ACTION_SIZE)
    x = jax.random.normal(k_x, (BATCH, STATE_SIZE), dtype=jnp.float32)

    out = critic_forward(x, w0_bf, w_bf, b_f32, ACTION_SIZE)
    out = jax.block_until_ready(out)
    assert out.shape == (BATCH, ACTION_SIZE)

    # Tight check against a bf16-matched reference (same math as the kernel).
    ref_b = critic_ref(x, w0_bf, w_bf, b_f32, ACTION_SIZE, cast_bf16=True)
    assert jnp.allclose(out, ref_b, atol=1e-3, rtol=1e-3), "mismatch vs bf16 reference"

    # Loose sanity check against the exact f32 (PyTorch-semantics) reference.
    ref_f = critic_ref(x, w0_f32, w_f32, b_f32, ACTION_SIZE, cast_bf16=False)
    assert jnp.allclose(out, ref_f, atol=0.1, rtol=0.1), "drifted from f32 semantics"

    print("KERNEL_OK")
</pallas_src>

<mosaic_0001>
module attributes {stable_mosaic.version = 11 : i64} {
  func.func @critic_kernel(%arg0: i32, %arg1: memref<8x16xf32, #tpu.memory_space<vmem>>, %arg2: memref<16x128xbf16, #tpu.memory_space<vmem>>, %arg3: memref<5x128x128xbf16, #tpu.memory_space<vmem>>, %arg4: memref<8x128xf32, #tpu.memory_space<vmem>>, %arg5: memref<8x4xf32, #tpu.memory_space<vmem>>) attributes {dimension_semantics = [#tpu.dimension_semantics<parallel>], iteration_bounds = array<i64: 1>, scalar_prefetch = 0 : i64, scratch_operands = 0 : i64, tpu.core_type = #tpu.core_type<tc>, window_params = [{transform_indices = @transform_0, window_bounds = array<i64: 8, 16>}, {pipeline_mode = #tpu.pipeline_mode<synchronous>, transform_indices = @transform_1, window_bounds = array<i64: 16, 128>}, {pipeline_mode = #tpu.pipeline_mode<synchronous>, transform_indices = @transform_2, window_bounds = array<i64: 5, 128, 128>}, {pipeline_mode = #tpu.pipeline_mode<synchronous>, transform_indices = @transform_3, window_bounds = array<i64: 8, 128>}, {transform_indices = @transform_4, window_bounds = array<i64: 8, 4>}]} {
    %c0 = arith.constant 0 : index
    %c0_0 = arith.constant 0 : index
    %0 = vector.load %arg1[%c0, %c0_0] : memref<8x16xf32, #tpu.memory_space<vmem>>, vector<8x16xf32>
    %1 = arith.truncf %0 : vector<8x16xf32> to vector<8x16xbf16>
    %c0_1 = arith.constant 0 : index
    %c0_2 = arith.constant 0 : index
    %2 = vector.load %arg2[%c0_1, %c0_2] : memref<16x128xbf16, #tpu.memory_space<vmem>>, vector<16x128xbf16>
    %cst = arith.constant dense<0.000000e+00> : vector<8x128xf32>
    %3 = tpu.matmul %1, %2, %cst {dimension_numbers = #tpu.dot_dimension_numbers<[1], [0], [0], [1], [0, 0, 1, 1], [], []>} : vector<8x16xbf16>, vector<16x128xbf16>, vector<8x128xf32> -> vector<8x128xf32>
    %c0_3 = arith.constant 0 : index
    %c0_4 = arith.constant 0 : index
    %4 = vector.load %arg4[%c0_3, %c0_4] : memref<8x128xf32, #tpu.memory_space<vmem>>, vector<1x128xf32>
    %5 = vector.shape_cast %4 : vector<1x128xf32> to vector<128xf32>
    %6 = vector.shape_cast %5 : vector<128xf32> to vector<1x128xf32>
    %7 = vector.broadcast %6 : vector<1x128xf32> to vector<8x128xf32>
    %8 = arith.addf %3, %7 : vector<8x128xf32>
    %cst_5 = arith.constant 0.00999999977 : f32
    %9 = vector.broadcast %cst_5 : f32 to vector<8x128xf32>
    %10 = arith.mulf %9, %8 : vector<8x128xf32>
    %11 = arith.maximumf %8, %10 : vector<8x128xf32>
    %12 = arith.truncf %11 : vector<8x128xf32> to vector<8x128xbf16>
    %c0_6 = arith.constant 0 : index
    %c0_7 = arith.constant 0 : index
    %c0_8 = arith.constant 0 : index
    %13 = vector.load %arg3[%c0_6, %c0_7, %c0_8] : memref<5x128x128xbf16, #tpu.memory_space<vmem>>, vector<1x128x128xbf16>
    %14 = vector.shape_cast %13 : vector<1x128x128xbf16> to vector<128x128xbf16>
    %cst_9 = arith.constant dense<0.000000e+00> : vector<8x128xf32>
    %15 = tpu.matmul %12, %14, %cst_9 {dimension_numbers = #tpu.dot_dimension_numbers<[1], [0], [0], [1], [0, 0, 1, 1], [], []>} : vector<8x128xbf16>, vector<128x128xbf16>, vector<8x128xf32> -> vector<8x128xf32>
    %c1 = arith.constant 1 : index
    %c0_10 = arith.constant 0 : index
    %16 = vector.load %arg4[%c1, %c0_10] : memref<8x128xf32, #tpu.memory_space<vmem>>, vector<1x128xf32>
    %17 = vector.shape_cast %16 : vector<1x128xf32> to vector<128xf32>
    %18 = vector.shape_cast %17 : vector<128xf32> to vector<1x128xf32>
    %19 = vector.broadcast %18 : vector<1x128xf32> to vector<8x128xf32>
    %20 = arith.addf %15, %19 : vector<8x128xf32>
    %cst_11 = arith.constant 0.00999999977 : f32
    %21 = vector.broadcast %cst_11 : f32 to vector<8x128xf32>
    %22 = arith.mulf %21, %20 : vector<8x128xf32>
    %23 = arith.maximumf %20, %22 : vector<8x128xf32>
    %24 = arith.truncf %23 : vector<8x128xf32> to vector<8x128xbf16>
    %c1_12 = arith.constant 1 : index
    %c0_13 = arith.constant 0 : index
    %c0_14 = arith.constant 0 : index
    %25 = vector.load %arg3[%c1_12, %c0_13, %c0_14] : memref<5x128x128xbf16, #tpu.memory_space<vmem>>, vector<1x128x128xbf16>
    %26 = vector.shape_cast %25 : vector<1x128x128xbf16> to vector<128x128xbf16>
    %cst_15 = arith.constant dense<0.000000e+00> : vector<8x128xf32>
    %27 = tpu.matmul %24, %26, %cst_15 {dimension_numbers = #tpu.dot_dimension_numbers<[1], [0], [0], [1], [0, 0, 1, 1], [], []>} : vector<8x128xbf16>, vector<128x128xbf16>, vector<8x128xf32> -> vector<8x128xf32>
    %c2 = arith.constant 2 : index
    %c0_16 = arith.constant 0 : index
    %28 = vector.load %arg4[%c2, %c0_16] : memref<8x128xf32, #tpu.memory_space<vmem>>, vector<1x128xf32>
    %29 = vector.shape_cast %28 : vector<1x128xf32> to vector<128xf32>
    %30 = vector.shape_cast %29 : vector<128xf32> to vector<1x128xf32>
    %31 = vector.broadcast %30 : vector<1x128xf32> to vector<8x128xf32>
    %32 = arith.addf %27, %31 : vector<8x128xf32>
    %cst_17 = arith.constant 0.00999999977 : f32
    %33 = vector.broadcast %cst_17 : f32 to vector<8x128xf32>
    %34 = arith.mulf %33, %32 : vector<8x128xf32>
    %35 = arith.maximumf %32, %34 : vector<8x128xf32>
    %36 = arith.truncf %35 : vector<8x128xf32> to vector<8x128xbf16>
    %c2_18 = arith.constant 2 : index
    %c0_19 = arith.constant 0 : index
    %c0_20 = arith.constant 0 : index
    %37 = vector.load %arg3[%c2_18, %c0_19, %c0_20] : memref<5x128x128xbf16, #tpu.memory_space<vmem>>, vector<1x128x128xbf16>
    %38 = vector.shape_cast %37 : vector<1x128x128xbf16> to vector<128x128xbf16>
    %cst_21 = arith.constant dense<0.000000e+00> : vector<8x128xf32>
    %39 = tpu.matmul %36, %38, %cst_21 {dimension_numbers = #tpu.dot_dimension_numbers<[1], [0], [0], [1], [0, 0, 1, 1], [], []>} : vector<8x128xbf16>, vector<128x128xbf16>, vector<8x128xf32> -> vector<8x128xf32>
    %c3 = arith.constant 3 : index
    %c0_22 = arith.constant 0 : index
    %40 = vector.load %arg4[%c3, %c0_22] : memref<8x128xf32, #tpu.memory_space<vmem>>, vector<1x128xf32>
    %41 = vector.shape_cast %40 : vector<1x128xf32> to vector<128xf32>
    %42 = vector.shape_cast %41 : vector<128xf32> to vector<1x128xf32>
    %43 = vector.broadcast %42 : vector<1x128xf32> to vector<8x128xf32>
    %44 = arith.addf %39, %43 : vector<8x128xf32>
    %cst_23 = arith.constant 0.00999999977 : f32
    %45 = vector.broadcast %cst_23 : f32 to vector<8x128xf32>
    %46 = arith.mulf %45, %44 : vector<8x128xf32>
    %47 = arith.maximumf %44, %46 : vector<8x128xf32>
    %48 = arith.truncf %47 : vector<8x128xf32> to vector<8x128xbf16>
    %c3_24 = arith.constant 3 : index
    %c0_25 = arith.constant 0 : index
    %c0_26 = arith.constant 0 : index
    %49 = vector.load %arg3[%c3_24, %c0_25, %c0_26] : memref<5x128x128xbf16, #tpu.memory_space<vmem>>, vector<1x128x128xbf16>
    %50 = vector.shape_cast %49 : vector<1x128x128xbf16> to vector<128x128xbf16>
    %cst_27 = arith.constant dense<0.000000e+00> : vector<8x128xf32>
    %51 = tpu.matmul %48, %50, %cst_27 {dimension_numbers = #tpu.dot_dimension_numbers<[1], [0], [0], [1], [0, 0, 1, 1], [], []>} : vector<8x128xbf16>, vector<128x128xbf16>, vector<8x128xf32> -> vector<8x128xf32>
    %c4 = arith.constant 4 : index
    %c0_28 = arith.constant 0 : index
    %52 = vector.load %arg4[%c4, %c0_28] : memref<8x128xf32, #tpu.memory_space<vmem>>, vector<1x128xf32>
    %53 = vector.shape_cast %52 : vector<1x128xf32> to vector<128xf32>
    %54 = vector.shape_cast %53 : vector<128xf32> to vector<1x128xf32>
    %55 = vector.broadcast %54 : vector<1x128xf32> to vector<8x128xf32>
    %56 = arith.addf %51, %55 : vector<8x128xf32>
    %cst_29 = arith.constant 0.00999999977 : f32
    %57 = vector.broadcast %cst_29 : f32 to vector<8x128xf32>
    %58 = arith.mulf %57, %56 : vector<8x128xf32>
    %59 = arith.maximumf %56, %58 : vector<8x128xf32>
    %60 = arith.truncf %59 : vector<8x128xf32> to vector<8x128xbf16>
    %c4_30 = arith.constant 4 : index
    %c0_31 = arith.constant 0 : index
    %c0_32 = arith.constant 0 : index
    %61 = vector.load %arg3[%c4_30, %c0_31, %c0_32] : memref<5x128x128xbf16, #tpu.memory_space<vmem>>, vector<1x128x128xbf16>
    %62 = vector.shape_cast %61 : vector<1x128x128xbf16> to vector<128x128xbf16>
    %cst_33 = arith.constant dense<0.000000e+00> : vector<8x128xf32>
    %63 = tpu.matmul %60, %62, %cst_33 {dimension_numbers = #tpu.dot_dimension_numbers<[1], [0], [0], [1], [0, 0, 1, 1], [], []>} : vector<8x128xbf16>, vector<128x128xbf16>, vector<8x128xf32> -> vector<8x128xf32>
    %c5 = arith.constant 5 : index
    %c0_34 = arith.constant 0 : index
    %64 = vector.load %arg4[%c5, %c0_34] : memref<8x128xf32, #tpu.memory_space<vmem>>, vector<1x128xf32>
    %65 = vector.shape_cast %64 : vector<1x128xf32> to vector<128xf32>
    %66 = vector.shape_cast %65 : vector<128xf32> to vector<1x128xf32>
    %67 = vector.broadcast %66 : vector<1x128xf32> to vector<8x128xf32>
    %68 = arith.addf %63, %67 : vector<8x128xf32>
    %cst_35 = arith.constant 0.00999999977 : f32
    %69 = vector.broadcast %cst_35 : f32 to vector<8x128xf32>
    %70 = arith.mulf %69, %68 : vector<8x128xf32>
    %71 = arith.maximumf %68, %70 : vector<8x128xf32>
    %72 = vector.extract_strided_slice %71 {offsets = [0, 0], sizes = [8, 4], strides = [1, 1]} : vector<8x128xf32> to vector<8x4xf32>
    %c0_36 = arith.constant 0 : index
    %c0_37 = arith.constant 0 : index
    %73 = vector.load %arg5[%c0_36, %c0_37] : memref<8x4xf32, #tpu.memory_space<vmem>>, vector<8x4xf32>
    tpu.vector_store %arg5[%c0_36, %c0_37], %72 {strides = array<i32>} : memref<8x4xf32, #tpu.memory_space<vmem>>, vector<8x4xf32>,
    return
  }
  func.func @transform_0(%arg0: i32) -> (i32, i32) {
    %c0_i32 = arith.constant 0 : i32
    %c0_i32_0 = arith.constant 0 : i32
    return %arg0, %c0_i32 : i32, i32
  }
  func.func @transform_1(%arg0: i32) -> (i32, i32) {
    %c0_i32 = arith.constant 0 : i32
    %c0_i32_0 = arith.constant 0 : i32
    %c0_i32_1 = arith.constant 0 : i32
    return %c0_i32, %c0_i32_0 : i32, i32
  }
  func.func @transform_2(%arg0: i32) -> (i32, i32, i32) {
    %c0_i32 = arith.constant 0 : i32
    %c0_i32_0 = arith.constant 0 : i32
    %c0_i32_1 = arith.constant 0 : i32
    %c0_i32_2 = arith.constant 0 : i32
    return %c0_i32, %c0_i32_0, %c0_i32_1 : i32, i32, i32
  }
  func.func @transform_3(%arg0: i32) -> (i32, i32) {
    %c0_i32 = arith.constant 0 : i32
    %c0_i32_0 = arith.constant 0 : i32
    %c0_i32_1 = arith.constant 0 : i32
    return %c0_i32, %c0_i32_0 : i32, i32
  }
  func.func @transform_4(%arg0: i32) -> (i32, i32) {
    %c0_i32 = arith.constant 0 : i32
    %c0_i32_0 = arith.constant 0 : i32
    return %arg0, %c0_i32 : i32, i32
  }
}

</mosaic_0001>

<bundles_post_ra>
// kernel: tpu_custom_call.1
= control target key start
LH: loop header
LB: loop body
LE: loop exit
PB: predicated region body
PF: predicated region fallthrough
CT: control target
= control target key end

     0   :  { %9 = vsyncpa [#allocation3], 0  ;;  %s897_s0 = inlined_call_operand.hbm [shape: f32[8,16], index: 0, kind: input, shape index: {}]   ;;  %s898_s1 = inlined_call_operand.hbm [shape: bf16[16,128], index: 1, kind: input, shape index: {}]   ;;  %s899_s2 = inlined_call_operand.hbm [shape: bf16[5,128,128], index: 2, kind: input, shape index: {}]   ;;  %s900_s3 = inlined_call_operand.hbm [shape: f32[8,128], index: 3, kind: input, shape index: {}]   ;;  %s901_s4 = inlined_call_operand.vmem [shape: f32[8,4], index: 4, kind: output, shape index: {}]  }
   0x1   :  { %10 = vsyncpa [#allocation5], 0  ;;  %s27_s17 = sshll.u32 %s898_s1, 4  ;;  %s28_s17 = int_to_ptr.hbm [resolvable:$true] %s27_s17 }
   0x2   :  { %11 = vsyncpa [#allocation8], 0  ;;  %s851_s18 = smov [#allocation4]   ;;  %s17_s22 = sshll.u32 %s897_s0, 4  ;;  %s18_s22 = int_to_ptr.hbm [resolvable:$true] %s17_s22 }
   0x3   :  { %s29_s19 = sshll.u32 %s851_s18, 4  ;;  %s852_s23 = smov 64   ;;  %s30_s19 = int_to_ptr.vmem [resolvable:$true] %s29_s19 }
   0x4   :  { %s853_s24 = smov 4   ;;  %s854_s25 = smov [#allocation2]  }
   0x5   :  { %35 = dma.hbm_to_vmem [thread:$0]  %s28_s17, 128, %s30_s19, [#allocation5], %s852_s23, %s852_s23, %s853_s24  }
   0x6   :  { %s19_s26 = sshll.u32 %s854_s25, 4  ;;  %s40_s29 = sshll.u32 %s899_s2, 4  ;;  %s20_s26 = int_to_ptr.vmem [resolvable:$true] %s19_s26  ;;  %s41_s29 = int_to_ptr.hbm [resolvable:$true] %s40_s29 }
   0x7   :  { %22 = dma.hbm_to_vmem [thread:$0]  %s18_s22, 128, %s20_s26, [#allocation3]  }
   0x8   :  { %s54_s5 = sshll.u32 %s900_s3, 4  ;;  %s855_s6 = smov [#allocation6]   ;;  %s55_s5 = int_to_ptr.hbm [resolvable:$true] %s54_s5 }
   0x9   :  { %s42_s7 = sshll.u32 %s855_s6, 4  ;;  %s856_s0 = smov [#allocation7]   ;;  %s43_s7 = int_to_ptr.vmem [resolvable:$true] %s42_s7 }
   0xa   :  { %48 = dma.hbm_to_vmem [thread:$0]  %s41_s29, 5120, %s43_s7, [#allocation5], %s852_s23, %s852_s23, %s853_s24  }
   0xb   :  { %s56_s8 = sshll.u32 %s856_s0, 4  ;;  %s57_s8 = int_to_ptr.vmem [resolvable:$true] %s56_s8 }
   0xc   :  { %59 = dma.hbm_to_vmem [thread:$0]  %s55_s5, 128, %s57_s8, [#allocation8]  }
   0xd   :  { %845 = dma.done.wait [#allocation3], 128  }
   0xe   :  { %846 = vsyncadd [#allocation3], 4294967168 }
   0xf   :  { %847 = dma.done.wait [#allocation5], 5248  }
  0x10   :  { %848 = vsyncadd [#allocation5], 4294962048 }
  0x11   :  { %849 = dma.done.wait [#allocation8], 128  }
  0x12   :  { %850 = vsyncadd [#allocation8], 4294967168  ;;  %v696_v0 = vld [vmem:[#allocation4] sm:$0xff]  ;;  %v77_v1 = vld [vmem:[#allocation2] sm:$0xff]  ;;  %vm89_vm0 = vcmask 130048   ;;  %vm522_vm1 = vcmask 31744  }
  0x13   :  { %v704_v2 = vld [vmem:[#allocation6 + $0x38] sm:$0xff]  ;;  %v78_v3 = vpack.c.bf16 %v77_v1, %v77_v1  ;;  %100 = vmatpush.bf16.msra.mxu0 %v696_v0  ;;  %v703_v4 = vld [vmem:[#allocation6 + $0x30] sm:$0xff]  ;;  %v702_v5 = vld [vmem:[#allocation6 + $0x28] sm:$0xff] }
  0x14   :  { %175 = vmatpush.bf16.msra.mxu1 %v704_v2  ;;  %v701_v6 = vld [vmem:[#allocation6 + $0x20] sm:$0xff]  ;;  %v700_v7 = vld [vmem:[#allocation6 + $0x18] sm:$0xff]  ;;  %v699_v8 = vld [vmem:[#allocation6 + $0x10] sm:$0xff] }
  0x15   :  { %v698_v9 = vld [vmem:[#allocation6 + $0x8] sm:$0xff]  ;;  %v697_v10 = vld [vmem:[#allocation6] sm:$0xff]  ;;  %v712_v11 = vld [vmem:[#allocation6 + $0x78] sm:$0xff] }
  0x16   :  { %535 = vmatmul.msk.bf16.vlgmr.msra.gmra.mxu0 %vm89_vm0, %v78_v3  ;;  %258 = vmatpush.bf16.msra.mxu2 %v712_v11  ;;  %v711_v12 = vld [vmem:[#allocation6 + $0x70] sm:$0xff]  ;;  %v710_v13 = vld [vmem:[#allocation6 + $0x68] sm:$0xff]  ;;  %v709_v14 = vld [vmem:[#allocation6 + $0x60] sm:$0xff] }
  0x17   :  { %v708_v15 = vld [vmem:[#allocation6 + $0x58] sm:$0xff]  ;;  %v707_v16 = vld [vmem:[#allocation6 + $0x50] sm:$0xff]  ;;  %v743_v17 = vld [vmem:[#allocation7] ss:$0 sm:$0xff] }
  0x18   :  { %176 = vmatpush.bf16.msra.mxu1 %v703_v4  ;;  %v706_v24 = vld [vmem:[#allocation6 + $0x48] sm:$0xff]  ;;  %v705_v25 = vld [vmem:[#allocation6 + $0x40] sm:$0xff]  ;;  %v720_v26 = vld [vmem:[#allocation6 + $0xb8] sm:$0xff] }
  0x19   :  { %341 = vmatpush.bf16.msra.mxu3 %v720_v26  ;;  %v719_v27 = vld [vmem:[#allocation6 + $0xb0] sm:$0xff]  ;;  %v718_v28 = vld [vmem:[#allocation6 + $0xa8] sm:$0xff]  ;;  %v717_v29 = vld [vmem:[#allocation6 + $0xa0] sm:$0xff] }
  0x1a   :  { %259 = vmatpush.bf16.msra.mxu2 %v711_v12  ;;  %v716_v30 = vld [vmem:[#allocation6 + $0x98] sm:$0xff]  ;;  %v715_v31 = vld [vmem:[#allocation6 + $0x90] sm:$0xff]  ;;  %v744_v32 = vld [vmem:[#allocation7 + $0x1] ss:$0 sm:$0xff] }
  0x1b   :  { %v714_v39 = vld [vmem:[#allocation6 + $0x88] sm:$0xff]  ;;  %v713_v40 = vld [vmem:[#allocation6 + $0x80] sm:$0xff]  ;;  %v728_v41 = vld [vmem:[#allocation6 + $0xf8] sm:$0xff] }
  0x1c   :  { %177 = vmatpush.bf16.msra.mxu1 %v702_v5  ;;  %424 = vmatpush.bf16.msrb.mxu0 %v728_v41  ;;  %v727_v42 = vld [vmem:[#allocation6 + $0xf0] sm:$0xff]  ;;  %v726_v43 = vld [vmem:[#allocation6 + $0xe8] sm:$0xff]  ;;  %v725_v44 = vld [vmem:[#allocation6 + $0xe0] sm:$0xff] }
  0x1d   :  { %342 = vmatpush.bf16.msra.mxu3 %v719_v27  ;;  %v724_v45 = vld [vmem:[#allocation6 + $0xd8] sm:$0xff]  ;;  %v723_v46 = vld [vmem:[#allocation6 + $0xd0] sm:$0xff]  ;;  %v745_v47 = vld [vmem:[#allocation7 + $0x2] ss:$0 sm:$0xff] }
  0x1e   :  { %260 = vmatpush.bf16.msra.mxu2 %v710_v13  ;;  %v722_v54 = vld [vmem:[#allocation6 + $0xc8] sm:$0xff]  ;;  %v721_v55 = vld [vmem:[#allocation6 + $0xc0] sm:$0xff]  ;;  %v736_v56 = vld [vmem:[#allocation6 + $0x138] sm:$0xff] }
  0x1f   :  { %v735_v57 = vld [vmem:[#allocation6 + $0x130] sm:$0xff]  ;;  %v734_v58 = vld [vmem:[#allocation6 + $0x128] sm:$0xff]  ;;  %v733_v59 = vld [vmem:[#allocation6 + $0x120] sm:$0xff] }
  0x20   :  { %178 = vmatpush.bf16.msra.mxu1 %v701_v6  ;;  %425 = vmatpush.bf16.msrb.mxu0 %v727_v42  ;;  %v732_v60 = vld [vmem:[#allocation6 + $0x118] sm:$0xff]  ;;  %v731_v61 = vld [vmem:[#allocation6 + $0x110] sm:$0xff]  ;;  %v746_v62 = vld [vmem:[#allocation7 + $0x3] ss:$0 sm:$0xff] }
  0x21   :  { %343 = vmatpush.bf16.msra.mxu3 %v718_v28  ;;  %v730_v5 = vld [vmem:[#allocation6 + $0x108] sm:$0xff]  ;;  %v729_v6 = vld [vmem:[#allocation6 + $0x100] sm:$0xff] }
  0x22   :  { %261 = vmatpush.bf16.msra.mxu2 %v709_v14  ;;  %v748_v14 = vld [vmem:[#allocation7 + $0x5] ss:$0 sm:$0xff] }
  0x24   :  { %179 = vmatpush.bf16.msra.mxu1 %v700_v7  ;;  %426 = vmatpush.bf16.msrb.mxu0 %v726_v43  ;;  %v747_v7 = vld [vmem:[#allocation7 + $0x4] ss:$0 sm:$0xff] }
  0x25   :  { %344 = vmatpush.bf16.msra.mxu3 %v717_v29 }
  0x26   :  { %262 = vmatpush.bf16.msra.mxu2 %v708_v15 }
  0x28   :  { %180 = vmatpush.bf16.msra.mxu1 %v699_v8  ;;  %427 = vmatpush.bf16.msrb.mxu0 %v725_v44 }
  0x29   :  { %345 = vmatpush.bf16.msra.mxu3 %v716_v30 }
  0x2a   :  { %263 = vmatpush.bf16.msra.mxu2 %v707_v16 }
  0x2c   :  { %181 = vmatpush.bf16.msra.mxu1 %v698_v9  ;;  %428 = vmatpush.bf16.msrb.mxu0 %v724_v45 }
  0x2d   :  { %346 = vmatpush.bf16.msra.mxu3 %v715_v31 }
  0x2e   :  { %264 = vmatpush.bf16.msra.mxu2 %v706_v24 }
  0x30   :  { %182 = vmatpush.bf16.msra.mxu1 %v697_v10  ;;  %429 = vmatpush.bf16.msrb.mxu0 %v723_v46 }
  0x31   :  { %347 = vmatpush.bf16.msra.mxu3 %v714_v39 }
  0x32   :  { %265 = vmatpush.bf16.msra.mxu2 %v705_v25 }
  0x34   :  { %430 = vmatpush.bf16.msrb.mxu0 %v722_v54  ;;  %507 = vmatpush.bf16.msrb.mxu1 %v736_v56 }
  0x35   :  { %348 = vmatpush.bf16.msra.mxu3 %v713_v40 }
  0x38   :  { %431 = vmatpush.bf16.msrb.mxu0 %v721_v55  ;;  %508 = vmatpush.bf16.msrb.mxu1 %v735_v57 }
  0x3c   :  { %509 = vmatpush.bf16.msrb.mxu1 %v734_v58 }
  0x40   :  { %510 = vmatpush.bf16.msrb.mxu1 %v733_v59 }
  0x44   :  { %511 = vmatpush.bf16.msrb.mxu1 %v732_v60 }
  0x48   :  { %512 = vmatpush.bf16.msrb.mxu1 %v731_v61 }
  0x4c   :  { %513 = vmatpush.bf16.msrb.mxu1 %v730_v5 }
  0x50   :  { %514 = vmatpush.bf16.msrb.mxu1 %v729_v6 }
  0x93   :  { %v102_v18 = vpop.f32.mrf.mxu0 }
  0x94   :  { %v103_v19 = vadd.f32 %v743_v17, %v102_v18 }
  0x96   :  { %v106_v20 = vmul.f32 0.01, %v103_v19 }
  0x98   :  { %v107_v21 = vmax.f32 %v103_v19, %v106_v20 }
  0x9a   :  { %v108_v22 = vpack.c.bf16 %v107_v21, %v107_v21 }
  0x9b   :  { %v104_v23 = vpop.f32.mrf.mxu0 }
  0x9c   :  { %183 = vmatmul.bf16.vlgmr.msra.gmra.mxu1 %v108_v22 }
 0x119   :  { %v184_v33 = vpop.f32.mrf.mxu1 }
 0x11a   :  { %v185_v34 = vadd.f32 %v744_v32, %v184_v33 }
 0x11c   :  { %v188_v35 = vmul.f32 0.01, %v185_v34 }
 0x11e   :  { %v189_v36 = vmax.f32 %v185_v34, %v188_v35 }
 0x120   :  { %v190_v37 = vpack.c.bf16 %v189_v36, %v189_v36 }
 0x121   :  { %v186_v38 = vpop.f32.mrf.mxu1 }
 0x122   :  { %266 = vmatmul.bf16.vlgmr.msra.gmra.mxu2 %v190_v37 }
 0x1a5   :  { %v267_v48 = vpop.f32.mrf.mxu2 }
 0x1a6   :  { %v268_v49 = vadd.f32 %v745_v47, %v267_v48 }
 0x1a8   :  { %v271_v50 = vmul.f32 0.01, %v268_v49 }
 0x1aa   :  { %v272_v51 = vmax.f32 %v268_v49, %v271_v50 }
 0x1ac   :  { %v273_v52 = vpack.c.bf16 %v272_v51, %v272_v51 }
 0x1ad   :  { %v269_v53 = vpop.f32.mrf.mxu2 }
 0x1ae   :  { %349 = vmatmul.bf16.vlgmr.msra.gmra.mxu3 %v273_v52 }
 0x231   :  { %v350_v63 = vpop.f32.mrf.mxu3 }
 0x232   :  { %v351_v0 = vadd.f32 %v746_v62, %v350_v63 }
 0x234   :  { %v354_v1 = vmul.f32 0.01, %v351_v0 }
 0x236   :  { %v355_v2 = vmax.f32 %v351_v0, %v354_v1 }
 0x238   :  { %v356_v3 = vpack.c.bf16 %v355_v2, %v355_v2 }
 0x239   :  { %v352_v4 = vpop.f32.mrf.mxu3 }
 0x23a   :  { %432 = vmatmul.bf16.vlgmr.msrb.gmra.mxu0 %v356_v3 }
 0x2b7   :  { %v433_v8 = vpop.f32.mrf.mxu0 }
 0x2b8   :  { %v434_v9 = vadd.f32 %v747_v7, %v433_v8 }
 0x2ba   :  { %v437_v10 = vmul.f32 0.01, %v434_v9 }
 0x2bc   :  { %v438_v11 = vmax.f32 %v434_v9, %v437_v10 }
 0x2be   :  { %v439_v12 = vpack.c.bf16 %v438_v11, %v438_v11 }
 0x2bf   :  { %v435_v13 = vpop.f32.mrf.mxu0 }
 0x2c0   :  { %515 = vmatmul.bf16.vlgmr.msrb.gmra.mxu1 %v439_v12 }
 0x33d   :  { %v516_v15 = vpop.f32.mrf.mxu1 }
 0x33e   :  { %v517_v16 = vadd.f32 %v748_v14, %v516_v15 }
 0x340   :  { %v520_v17 = vmul.f32 0.01, %v517_v16 }
 0x342   :  { %v521_v18 = vmax.f32 %v517_v16, %v520_v17 }
 0x344   :  { %523 = vst.msk [vmem:[%s901_s4] sm:$0xff] %vm522_vm1, %v521_v18 }
 0x345   :  { %v518_v19 = vpop.f32.mrf.mxu1 }
 0x346   :  { %528 = vsyncpa [#allocation3], 1 }
 0x347   :  { %529 = vsyncpa [#allocation5], 1 }
 0x348   :  { %530 = vsyncpa [#allocation8], 1 }

</bundles_post_ra>
